<compile_context>
chip_gen: v6e
topology: v6e:2x2x1
jax: 0.10.0
libtpu: 0.0.40
codegen_flags: <defaults>
</compile_context>

<pallas_src>
import functools

import jax
import jax.numpy as jnp
from jax import lax
from jax.experimental import pallas as pl
from jax.experimental.pallas import tpu as pltpu


def _mlp_kernel(x_ref, wg_ref, wu_ref, w2_ref, o_ref, acc_ref, *,
                f_total, tf, mask_tail):
    # x_ref:  (tm, H)  bf16 — same block across the F axis (Buffered(1))
    # wg_ref: (H, tf)  bf16 — gate weight slab (streamed along F)
    # wu_ref: (H, tf)  bf16 — up/linear weight slab (streamed along F)
    # w2_ref: (tf, H)  bf16 — down-projection slab (streamed along F)
    # o_ref:  (tm, H)  bf16 — written once, on the last F step
    # acc_ref:(tm, H)  f32  — fc2 accumulator, persists across the F axis
    k = pl.program_id(1)

    @pl.when(k == 0)
    def _init():
        acc_ref[...] = jnp.zeros_like(acc_ref)

    x = x_ref[...]
    # fc1, split into gate / up: two MXU dots with f32 accumulation.
    g = jnp.dot(x, wg_ref[...], preferred_element_type=jnp.float32)
    u = jnp.dot(x, wu_ref[...], preferred_element_type=jnp.float32)

    # SwiGLU in f32 (sigmoid -> EUP, muls -> VPU).
    act = g * jax.nn.sigmoid(g) * u
    w2 = w2_ref[...]

    if mask_tail:
        # F is not a multiple of tf: zero act columns and W_down rows beyond F.
        col = k * tf + lax.broadcasted_iota(jnp.int32, act.shape, 1)
        act = jnp.where(col < f_total, act, jnp.zeros_like(act))
        row = k * tf + lax.broadcasted_iota(jnp.int32, w2.shape, 0)
        w2 = jnp.where(row < f_total, w2, jnp.zeros_like(w2))

    # Single bf16 cast feeding the fc2 MXU dot; partial sum over this F slab.
    acc_ref[...] += jnp.dot(act.astype(jnp.bfloat16), w2,
                            preferred_element_type=jnp.float32)

    @pl.when(k == pl.num_programs(1) - 1)
    def _finalize():
        o_ref[...] = acc_ref[...].astype(o_ref.dtype)


def _round_up(x, m):
    return ((x + m - 1) // m) * m


def _vmem_capacity_bytes():
    try:
        return pltpu.get_tpu_info().vmem_capacity_bytes
    except Exception:
        return 64 << 20  # conservative: v7x per-TensorCore VMEM


def _spec(block_shape, index_map, buffers=None):
    """BlockSpec with optional pipeline depth; falls back if unsupported."""
    if buffers is not None and hasattr(pl, "Buffered"):
        try:
            return pl.BlockSpec(block_shape, index_map,
                                pipeline_mode=pl.Buffered(buffers))
        except TypeError:
            pass
    return pl.BlockSpec(block_shape, index_map)


def _vmem_bytes(tm, tf, H):
    bf16 = 2
    return (tm * H * bf16              # x tile (Buffered(1))
            + 2 * 2 * H * tf * bf16    # w_gate + w_up slabs (double-buffered)
            + 2 * tf * H * bf16        # w_down slab (double-buffered)
            + tm * H * bf16            # output tile (Buffered(1))
            + tm * H * 4)              # f32 accumulator scratch


def mlp_pallas(hidden_states, w_gate, w_up, w_down, *, tm=512, tf=None):
    """hidden_states: (B, S, H) bf16.

    Weights are expected pre-transposed (stored this way in params, not
    transposed per call):
      w_gate: (H, F) bf16  = fc1.weight[:F, :].T
      w_up:   (H, F) bf16  = fc1.weight[F:, :].T
      w_down: (F, H) bf16  = fc2.weight.T
    """
    B, S, H = hidden_states.shape
    F = w_gate.shape[1]
    M = B * S
    x2d = hidden_states.reshape(M, H)

    vmem_cap = _vmem_capacity_bytes()
    if tf is None:
        # 128 MiB parts (v5e/v6e): tf=1024 halves the number of k steps
        # (fewer accumulator RMW passes).  64 MiB parts (v7x): tf=512.
        tf = 1024 if vmem_cap >= (96 << 20) else 512

    # Clamp tiles for small problems; keep (8, 128) / bf16-packing constraints.
    tm = min(tm, _round_up(M, 16))
    tf = min(tf, _round_up(F, 128))

    # Generation-aware VMEM budget: shrink tf (never tm) if it will not fit.
    budget = max(vmem_cap - (12 << 20), 16 << 20)
    while _vmem_bytes(tm, tf, H) > budget and tf > 256 and tf % 256 == 0:
        tf //= 2

    grid_m = pl.cdiv(M, tm)
    grid_k = pl.cdiv(F, tf)
    grid = (grid_m, grid_k)
    mask_tail = (F % tf) != 0

    vmem_limit = min(_vmem_bytes(tm, tf, H) + (16 << 20), vmem_cap - (4 << 20))
    vmem_limit = max(vmem_limit, 16 << 20)

    bf16 = 2
    cost = pl.CostEstimate(
        flops=6 * M * F * H,                                  # 3 matmuls
        transcendentals=M * F,                                # sigmoid
        bytes_accessed=(2 * M * H) * bf16 + grid_m * 3 * H * F * bf16,
    )

    kernel = functools.partial(_mlp_kernel, f_total=F, tf=tf,
                               mask_tail=mask_tail)

    out2d = pl.pallas_call(
        kernel,
        out_shape=jax.ShapeDtypeStruct((M, H), hidden_states.dtype),
        grid_spec=pltpu.PrefetchScalarGridSpec(
            num_scalar_prefetch=0,
            grid=grid,
            in_specs=[
                _spec((tm, H), lambda i, k: (i, 0), buffers=1),  # x rows tile
                _spec((H, tf), lambda i, k: (0, k)),             # W_gate slab
                _spec((H, tf), lambda i, k: (0, k)),             # W_up slab
                _spec((tf, H), lambda i, k: (k, 0)),             # W_down slab
            ],
            out_specs=_spec((tm, H), lambda i, k: (i, 0), buffers=1),
            scratch_shapes=[pltpu.VMEM((tm, H), jnp.float32)],
        ),
        compiler_params=pltpu.CompilerParams(
            dimension_semantics=("parallel", "arbitrary"),
            vmem_limit_bytes=int(vmem_limit),
        ),
        cost_estimate=cost,
    )(x2d, w_gate, w_up, w_down)
    return out2d.reshape(B, S, H)


def mlp_reference(hidden_states, w_gate, w_up, w_down):
    x = hidden_states.astype(jnp.float32)
    g = jnp.dot(x, w_gate.astype(jnp.float32))
    u = jnp.dot(x, w_up.astype(jnp.float32))
    act = (g * jax.nn.sigmoid(g) * u).astype(jnp.bfloat16)
    out = jnp.dot(act.astype(jnp.float32), w_down.astype(jnp.float32))
    return out.astype(jnp.bfloat16)


def _make_case(key, B, S, H, F):
    k_x, k_w1, k_w2 = jax.random.split(key, 3)
    hidden_states = (jax.random.normal(k_x, (B, S, H), jnp.float32)
                     .astype(jnp.bfloat16))
    # fc1.weight: (2F, H); fc2.weight: (H, F)   (nn.Linear stores (out, in)).
    fc1_w = (0.02 * jax.random.normal(k_w1, (2 * F, H), jnp.float32)
             ).astype(jnp.bfloat16)
    fc2_w = (0.02 * jax.random.normal(k_w2, (H, F), jnp.float32)
             ).astype(jnp.bfloat16)
    # One-time param prep (would be stored like this; not re-done per call).
    w_gate = jnp.asarray(fc1_w[:F, :].T)   # (H, F)
    w_up = jnp.asarray(fc1_w[F:, :].T)     # (H, F)
    w_down = jnp.asarray(fc2_w.T)          # (F, H)
    return hidden_states, w_gate, w_up, w_down


if __name__ == "__main__":
    key = jax.random.PRNGKey(0)
    k1, k2 = jax.random.split(key)

    # Case 1: small config consistent with the module
    #   (hidden_size=128, ffn_hidden_size=256, add_bias_linear=False).
    B, S, H, F = 2, 16, 128, 256
    hs, wg, wu, wd = _make_case(k1, B, S, H, F)
    out = jax.block_until_ready(mlp_pallas(hs, wg, wu, wd))
    ref = mlp_reference(hs, wg, wu, wd)
    assert out.shape == (B, S, H) and out.dtype == jnp.bfloat16
    assert jnp.allclose(out.astype(jnp.float32), ref.astype(jnp.float32),
                        atol=2e-2, rtol=2e-2)

    # Case 2: F not a multiple of tf (exercises the partial-F-slab masking
    # path that is live at GLM4's F=13696).
    B2, S2, H2, F2 = 2, 16, 128, 320
    hs2, wg2, wu2, wd2 = _make_case(k2, B2, S2, H2, F2)
    out2 = jax.block_until_ready(mlp_pallas(hs2, wg2, wu2, wd2, tf=128))
    ref2 = mlp_reference(hs2, wg2, wu2, wd2)
    assert out2.shape == (B2, S2, H2) and out2.dtype == jnp.bfloat16
    assert jnp.allclose(out2.astype(jnp.float32), ref2.astype(jnp.float32),
                        atol=2e-2, rtol=2e-2)

    print("KERNEL_OK")
</pallas_src>

<mosaic_0001>
module attributes {stable_mosaic.version = 11 : i64} {
  func.func @_mlp_kernel(%arg0: i32, %arg1: i32, %arg2: memref<32x128xbf16, #tpu.memory_space<vmem>>, %arg3: memref<128x256xbf16, #tpu.memory_space<vmem>>, %arg4: memref<128x256xbf16, #tpu.memory_space<vmem>>, %arg5: memref<256x128xbf16, #tpu.memory_space<vmem>>, %arg6: memref<32x128xbf16, #tpu.memory_space<vmem>>, %arg7: memref<32x128xf32, #tpu.memory_space<vmem>>) attributes {dimension_semantics = [#tpu.dimension_semantics<parallel>, #tpu.dimension_semantics<arbitrary>], iteration_bounds = array<i64: 1, 1>, scalar_prefetch = 0 : i64, scratch_operands = 1 : i64, tpu.core_type = #tpu.core_type<tc>, window_params = [{pipeline_mode = #tpu.pipeline_mode<synchronous>, transform_indices = @transform_0, window_bounds = array<i64: 32, 128>}, {transform_indices = @transform_1, window_bounds = array<i64: 128, 256>}, {transform_indices = @transform_2, window_bounds = array<i64: 128, 256>}, {transform_indices = @transform_3, window_bounds = array<i64: 256, 128>}, {pipeline_mode = #tpu.pipeline_mode<synchronous>, transform_indices = @transform_4, window_bounds = array<i64: 32, 128>}]} {
    %c0_i32 = arith.constant 0 : i32
    %0 = arith.cmpi eq, %arg1, %c0_i32 : i32
    %1 = arith.extui %0 : i1 to i32
    %c0_i32_0 = arith.constant 0 : i32
    %2 = arith.cmpi ne, %1, %c0_i32_0 : i32
    scf.if %2 {
      %cst_17 = arith.constant 0.000000e+00 : f32
      %24 = vector.broadcast %cst_17 : f32 to vector<32x128xf32>
      %c0_18 = arith.constant 0 : index
      %c0_19 = arith.constant 0 : index
      %25 = vector.load %arg7[%c0_18, %c0_19] : memref<32x128xf32, #tpu.memory_space<vmem>>, vector<32x128xf32>
      tpu.vector_store %arg7[%c0_18, %c0_19], %24 {strides = array<i32>} : memref<32x128xf32, #tpu.memory_space<vmem>>, vector<32x128xf32>,
    } else {
    }
    %c0 = arith.constant 0 : index
    %c0_1 = arith.constant 0 : index
    %3 = vector.load %arg2[%c0, %c0_1] : memref<32x128xbf16, #tpu.memory_space<vmem>>, vector<32x128xbf16>
    %c0_2 = arith.constant 0 : index
    %c0_3 = arith.constant 0 : index
    %4 = vector.load %arg3[%c0_2, %c0_3] : memref<128x256xbf16, #tpu.memory_space<vmem>>, vector<128x256xbf16>
    %cst = arith.constant dense<0.000000e+00> : vector<32x256xf32>
    %5 = tpu.matmul %3, %4, %cst {dimension_numbers = #tpu.dot_dimension_numbers<[1], [0], [0], [1], [0, 0, 1, 1], [], []>} : vector<32x128xbf16>, vector<128x256xbf16>, vector<32x256xf32> -> vector<32x256xf32>
    %c0_4 = arith.constant 0 : index
    %c0_5 = arith.constant 0 : index
    %6 = vector.load %arg4[%c0_4, %c0_5] : memref<128x256xbf16, #tpu.memory_space<vmem>>, vector<128x256xbf16>
    %cst_6 = arith.constant dense<0.000000e+00> : vector<32x256xf32>
    %7 = tpu.matmul %3, %6, %cst_6 {dimension_numbers = #tpu.dot_dimension_numbers<[1], [0], [0], [1], [0, 0, 1, 1], [], []>} : vector<32x128xbf16>, vector<128x256xbf16>, vector<32x256xf32> -> vector<32x256xf32>
    %8 = arith.negf %5 : vector<32x256xf32>
    %9 = math.exp %8 : vector<32x256xf32>
    %cst_7 = arith.constant 1.000000e+00 : f32
    %10 = vector.broadcast %cst_7 : f32 to vector<32x256xf32>
    %11 = arith.addf %10, %9 : vector<32x256xf32>
    %12 = arith.divf %10, %11 : vector<32x256xf32>
    %13 = arith.mulf %5, %12 : vector<32x256xf32>
    %14 = arith.mulf %13, %7 : vector<32x256xf32>
    %c0_8 = arith.constant 0 : index
    %c0_9 = arith.constant 0 : index
    %15 = vector.load %arg5[%c0_8, %c0_9] : memref<256x128xbf16, #tpu.memory_space<vmem>>, vector<256x128xbf16>
    %c0_10 = arith.constant 0 : index
    %c0_11 = arith.constant 0 : index
    %16 = vector.load %arg7[%c0_10, %c0_11] : memref<32x128xf32, #tpu.memory_space<vmem>>, vector<32x128xf32>
    %17 = arith.truncf %14 : vector<32x256xf32> to vector<32x256xbf16>
    %cst_12 = arith.constant dense<0.000000e+00> : vector<32x128xf32>
    %18 = tpu.matmul %17, %15, %cst_12 {dimension_numbers = #tpu.dot_dimension_numbers<[1], [0], [0], [1], [0, 0, 1, 1], [], []>} : vector<32x256xbf16>, vector<256x128xbf16>, vector<32x128xf32> -> vector<32x128xf32>
    %19 = arith.addf %16, %18 : vector<32x128xf32>
    %c0_13 = arith.constant 0 : index
    %c0_14 = arith.constant 0 : index
    %20 = vector.load %arg7[%c0_13, %c0_14] : memref<32x128xf32, #tpu.memory_space<vmem>>, vector<32x128xf32>
    tpu.vector_store %arg7[%c0_13, %c0_14], %19 {strides = array<i32>} : memref<32x128xf32, #tpu.memory_space<vmem>>, vector<32x128xf32>,
    %c0_i32_15 = arith.constant 0 : i32
    %21 = arith.cmpi eq, %arg1, %c0_i32_15 : i32
    %22 = arith.extui %21 : i1 to i32
    %c0_i32_16 = arith.constant 0 : i32
    %23 = arith.cmpi ne, %22, %c0_i32_16 : i32
    scf.if %23 {
      %c0_17 = arith.constant 0 : index
      %c0_18 = arith.constant 0 : index
      %24 = vector.load %arg7[%c0_17, %c0_18] : memref<32x128xf32, #tpu.memory_space<vmem>>, vector<32x128xf32>
      %25 = arith.truncf %24 : vector<32x128xf32> to vector<32x128xbf16>
      %c0_19 = arith.constant 0 : index
      %c0_20 = arith.constant 0 : index
      %26 = vector.load %arg6[%c0_19, %c0_20] : memref<32x128xbf16, #tpu.memory_space<vmem>>, vector<32x128xbf16>
      tpu.vector_store %arg6[%c0_19, %c0_20], %25 {strides = array<i32>} : memref<32x128xbf16, #tpu.memory_space<vmem>>, vector<32x128xbf16>,
    } else {
    }
    return
  }
  func.func @transform_0(%arg0: i32, %arg1: i32) -> (i32, i32) {
    %c0_i32 = arith.constant 0 : i32
    %c0_i32_0 = arith.constant 0 : i32
    return %arg0, %c0_i32 : i32, i32
  }
  func.func @transform_1(%arg0: i32, %arg1: i32) -> (i32, i32) {
    %c0_i32 = arith.constant 0 : i32
    %c0_i32_0 = arith.constant 0 : i32
    return %c0_i32, %arg1 : i32, i32
  }
  func.func @transform_2(%arg0: i32, %arg1: i32) -> (i32, i32) {
    %c0_i32 = arith.constant 0 : i32
    %c0_i32_0 = arith.constant 0 : i32
    return %c0_i32, %arg1 : i32, i32
  }
  func.func @transform_3(%arg0: i32, %arg1: i32) -> (i32, i32) {
    %c0_i32 = arith.constant 0 : i32
    %c0_i32_0 = arith.constant 0 : i32
    return %arg1, %c0_i32 : i32, i32
  }
  func.func @transform_4(%arg0: i32, %arg1: i32) -> (i32, i32) {
    %c0_i32 = arith.constant 0 : i32
    %c0_i32_0 = arith.constant 0 : i32
    return %arg0, %c0_i32 : i32, i32
  }
}

</mosaic_0001>

<bundles_post_ra>
// kernel: tpu_custom_call.1
= control target key start
LH: loop header
LB: loop body
LE: loop exit
PB: predicated region body
PF: predicated region fallthrough
CT: control target
= control target key end

     0   :  { %9 = vsyncpa [#allocation4], 0  ;;  %s1109_s0 = inlined_call_operand.hbm [shape: bf16[32,128], index: 0, kind: input, shape index: {}]   ;;  %s1110_s1 = inlined_call_operand.hbm [shape: bf16[128,256], index: 1, kind: input, shape index: {}]   ;;  %s1111_s2 = inlined_call_operand.hbm [shape: bf16[128,256], index: 2, kind: input, shape index: {}]   ;;  %s1112_s3 = inlined_call_operand.hbm [shape: bf16[256,128], index: 3, kind: input, shape index: {}]   ;;  %s1113_s4 = inlined_call_operand.hbm [shape: bf16[32,128], index: 4, kind: output, shape index: {}]  }
   0x1   :  { %10 = vsyncpa [#allocation7], 0 }
   0x2   :  { %11 = vsyncpa [#allocation10], 0 }
   0x3   :  { %12 = vsyncpa [#allocation5], 0  ;;  %s1036_s15 = smov [#allocation6]  }
   0x4   :  { %s30_s16 = sshll.u32 %s1036_s15, 4  ;;  %s31_s16 = int_to_ptr.vmem [resolvable:$true] %s30_s16 }
   0x5   :  { %s936_s17 = scalar_lea.vmem %s31_s16, 2048  ;;  %p941_p1 = scmp.lt.s32.totalorder %s31_s16, %s31_s16 }
   0x6   :  { %p937_p0 = scmp.ne.s32.totalorder %s31_s16, %s936_s17  ;;  %p942_p2 = scmp.lt.s32.totalorder %s936_s17, %s936_s17 }
   0x8   :  { %p943_p3 = por %p942_p2, %p941_p1 }
   0xa   :  { %p944_p4 = pnand %p943_p3, %p937_p0 }
   0xc   :  { %947 = shalt.err (!%p944_p4)
}
   0xd   :  { %s1037_s18 = smov 128   ;;  %s1038_s19 = smov 8  }
   0xe   :  { %36 = dma.hbm_to_vmem [thread:$0]  %s1110_s1, 2048, %s31_s16, [#allocation7], %s1037_s18, %s1037_s18, %s1038_s19  }
   0xf   :  { %s1039_s22 = smov [#allocation3]  }
  0x10   :  { %s18_s23 = sshll.u32 %s1039_s22, 4  ;;  %s19_s23 = int_to_ptr.vmem [resolvable:$true] %s18_s23 }
  0x11   :  { %s956_s24 = scalar_lea.vmem %s19_s23, 256  ;;  %p961_p6 = scmp.lt.s32.totalorder %s19_s23, %s19_s23 }
  0x12   :  { %p957_p5 = scmp.ne.s32.totalorder %s19_s23, %s956_s24  ;;  %p962_p7 = scmp.lt.s32.totalorder %s956_s24, %s956_s24 }
  0x14   :  { %p963_p8 = por %p962_p7, %p961_p6 }
  0x16   :  { %p964_p9 = pnand %p963_p8, %p957_p5 }
  0x18   :  { %967 = shalt.err (!%p964_p9)
}
  0x19   :  { %s1040_s25 = smov 64   ;;  %s1041_s26 = smov 4  }
  0x1a   :  { %24 = dma.hbm_to_vmem [thread:$0]  %s1109_s0, 256, %s19_s23, [#allocation4], %s1040_s25, %s1040_s25, %s1041_s26  }
  0x1b   :  { %s1042_s1 = smov [#allocation8]   ;;  %s1043_s30 = smov [#allocation9]  }
  0x1c   :  { %s42_s29 = sshll.u32 %s1042_s1, 4  ;;  %s54_s5 = sshll.u32 %s1043_s30, 4  ;;  %s43_s29 = int_to_ptr.vmem [resolvable:$true] %s42_s29  ;;  %s55_s5 = int_to_ptr.vmem [resolvable:$true] %s54_s5 }
  0x1d   :  { %s976_s6 = scalar_lea.vmem %s43_s29, 2048  ;;  %p981_p11 = scmp.lt.s32.totalorder %s43_s29, %s43_s29 }
  0x1e   :  { %p977_p10 = scmp.ne.s32.totalorder %s43_s29, %s976_s6  ;;  %p982_p12 = scmp.lt.s32.totalorder %s976_s6, %s976_s6 }
  0x20   :  { %p983_p13 = por %p982_p12, %p981_p11 }
  0x22   :  { %p984_p0 = pnand %p983_p13, %p977_p10 }
  0x24   :  { %987 = shalt.err (!%p984_p0)
}
  0x25   :  { %48 = dma.hbm_to_vmem [thread:$0]  %s1111_s2, 2048, %s43_s29, [#allocation7], %s1037_s18, %s1037_s18, %s1038_s19  }
  0x26   :  { %s996_s0 = scalar_lea.vmem %s55_s5, 2048  ;;  %p1001_p2 = scmp.lt.s32.totalorder %s55_s5, %s55_s5 }
  0x27   :  { %p997_p1 = scmp.ne.s32.totalorder %s55_s5, %s996_s0  ;;  %p1002_p3 = scmp.lt.s32.totalorder %s996_s0, %s996_s0 }
  0x29   :  { %p1003_p4 = por %p1002_p3, %p1001_p2 }
  0x2b   :  { %p1004_p5 = pnand %p1003_p4, %p997_p1 }
  0x2d   :  { %1007 = shalt.err (!%p1004_p5)
}
  0x2e   :  { %60 = dma.hbm_to_vmem [thread:$0]  %s1112_s3, 2048, %s55_s5, [#allocation10], %s1040_s25, %s1040_s25, %s1041_s26  }
  0x2f   :  { %1028 = dma.done.wait [#allocation4], 256  }
  0x30   :  { %1029 = vsyncadd [#allocation4], 4294967040 }
  0x31   :  { %1030 = dma.done.wait [#allocation7], 4096  }
  0x32   :  { %1031 = vsyncadd [#allocation7], 4294963200 }
  0x33   :  { %1032 = dma.done.wait [#allocation10], 2048  }
  0x34   :  { %1033 = vsyncadd [#allocation10], 4294965248  ;;  %v1044_v0 = vmov 0   ;;  %v830_v1 = vld [vmem:[#allocation6 + $0x74] ss:$8 sps:$4 sm:$0xff]   ;;  %v884_v39 = vld [vmem:[#allocation9 + $0x68] sm:$0xff]  }
  0x35   :  { %226 = vmatprep.mubr.bf16.mxu0 %v1044_v0  ;;  %375 = vmatprep.mubr.bf16.mxu1 %v1044_v0  ;;  %v832_v2 = vld [vmem:[#allocation6 + $0x70] ss:$8 sps:$4 sm:$0xff]   ;;  %v833_v3 = vld [vmem:[#allocation6 + $0x64] ss:$8 sps:$4 sm:$0xff]   ;;  %v835_v4 = vld [vmem:[#allocation6 + $0x60] ss:$8 sps:$4 sm:$0xff]  }
  0x36   :  { %194 = vmatprep.subr.bf16.mxu0 %v830_v1  ;;  %v836_v5 = vld [vmem:[#allocation6 + $0x54] ss:$8 sps:$4 sm:$0xff]   ;;  %v838_v6 = vld [vmem:[#allocation6 + $0x50] ss:$8 sps:$4 sm:$0xff]   ;;  %v839_v7 = vld [vmem:[#allocation6 + $0x44] ss:$8 sps:$4 sm:$0xff]  }
  0x37   :  { %195 = vmatpush1.bf16.msra.mxu0 %v832_v2  ;;  %v841_v8 = vld [vmem:[#allocation6 + $0x40] ss:$8 sps:$4 sm:$0xff]   ;;  %v853_v9 = vld [vmem:[#allocation8 + $0x74] ss:$8 sps:$4 sm:$0xff]   ;;  %v856_v10 = vld [vmem:[#allocation8 + $0x70] ss:$8 sps:$4 sm:$0xff]  }
  0x38   :  { %196 = vmatprep.subr.bf16.mxu0 %v833_v3  ;;  %v842_v11 = vld [vmem:[#allocation6 + $0x34] ss:$8 sps:$4 sm:$0xff]   ;;  %343 = vmatprep.subr.bf16.mxu1 %v853_v9  ;;  %v858_v12 = vld [vmem:[#allocation8 + $0x64] ss:$8 sps:$4 sm:$0xff]   ;;  %v860_v13 = vld [vmem:[#allocation8 + $0x60] ss:$8 sps:$4 sm:$0xff]  }
  0x39   :  { %344 = vmatpush1.bf16.msra.mxu1 %v856_v10  ;;  %v844_v14 = vld [vmem:[#allocation6 + $0x30] ss:$8 sps:$4 sm:$0xff]   ;;  %v861_v15 = vld [vmem:[#allocation8 + $0x54] ss:$8 sps:$4 sm:$0xff]   ;;  %v845_v16 = vld [vmem:[#allocation6 + $0x24] ss:$8 sps:$4 sm:$0xff]  }
  0x3a   :  { %345 = vmatprep.subr.bf16.mxu1 %v858_v12  ;;  %v847_v17 = vld [vmem:[#allocation6 + $0x20] ss:$8 sps:$4 sm:$0xff]   ;;  %v863_v18 = vld [vmem:[#allocation8 + $0x50] ss:$8 sps:$4 sm:$0xff]   ;;  %v865_v19 = vld [vmem:[#allocation8 + $0x44] ss:$8 sps:$4 sm:$0xff]  }
  0x3b   :  { %197 = vmatpush1.bf16.msra.mxu0 %v835_v4  ;;  %v848_v20 = vld [vmem:[#allocation6 + $0x14] ss:$8 sps:$4 sm:$0xff]   ;;  %v850_v21 = vld [vmem:[#allocation6 + $0x10] ss:$8 sps:$4 sm:$0xff]   ;;  %v851_v22 = vld [vmem:[#allocation6 + $0x4] ss:$8 sps:$4 sm:$0xff]  }
  0x3c   :  { %198 = vmatprep.subr.bf16.mxu0 %v836_v5  ;;  %v867_v23 = vld [vmem:[#allocation8 + $0x40] ss:$8 sps:$4 sm:$0xff]   ;;  %v868_v24 = vld [vmem:[#allocation8 + $0x34] ss:$8 sps:$4 sm:$0xff]   ;;  %v870_v25 = vld [vmem:[#allocation8 + $0x30] ss:$8 sps:$4 sm:$0xff]  }
  0x3d   :  { %346 = vmatpush1.bf16.msra.mxu1 %v860_v13  ;;  %v855_v26 = vld [vmem:[#allocation6] ss:$8 sps:$4 sm:$0xff]   ;;  %v871_v27 = vld [vmem:[#allocation8 + $0x24] ss:$8 sps:$4 sm:$0xff]   ;;  %v857_v28 = vld [vmem:[#allocation3] sm:$0xff]   ;;  %s1045_s2 = smov [#allocation11]  }
  0x3e   :  { %347 = vmatprep.subr.bf16.mxu1 %v861_v15  ;;  %v873_v29 = vld [vmem:[#allocation8 + $0x20] ss:$8 sps:$4 sm:$0xff]   ;;  %v874_v30 = vld [vmem:[#allocation8 + $0x14] ss:$8 sps:$4 sm:$0xff]   ;;  %v876_v31 = vld [vmem:[#allocation8 + $0x10] ss:$8 sps:$4 sm:$0xff]  }
  0x3f   :  { %199 = vmatpush1.bf16.msra.mxu0 %v838_v6  ;;  %v877_v32 = vld [vmem:[#allocation8 + $0x4] ss:$8 sps:$4 sm:$0xff]   ;;  %v864_v33 = vld [vmem:[#allocation3 + $0x8] sm:$0xff]   ;;  %v879_v34 = vld [vmem:[#allocation8] ss:$8 sps:$4 sm:$0xff]   ;;  %s685_s3 = sshll.u32 %s1045_s2, 4  ;;  %s686_s3 = int_to_ptr.vmem [resolvable:$true] %s685_s3 }
  0x40   :  { %200 = vmatprep.subr.bf16.mxu0 %v839_v7  ;;  %v880_v35 = vld [vmem:[#allocation9 + $0x78] sm:$0xff]   ;;  %v882_v37 = vld [vmem:[#allocation9 + $0x70] sm:$0xff]   ;;  %v885_v40 = vld [vmem:[#allocation9 + $0x28] sm:$0xff]   ;;  %s1008_s11 = scalar_lea.vmem %s686_s3, 256  ;;  %p1013_p7 = scmp.lt.s32.totalorder %s686_s3, %s686_s3 }
  0x41   :  { %348 = vmatpush1.bf16.msra.mxu1 %v863_v18  ;;  %v881_v36 = vld [vmem:[#allocation9 + $0x38] sm:$0xff]   ;;  %v883_v38 = vld [vmem:[#allocation9 + $0x30] sm:$0xff]   ;;  %v886_v41 = vld [vmem:[#allocation9 + $0x60] sm:$0xff]   ;;  %p1009_p6 = scmp.ne.s32.totalorder %s686_s3, %s1008_s11  ;;  %p1014_p8 = scmp.lt.s32.totalorder %s1008_s11, %s1008_s11 }
  0x42   :  { %349 = vmatprep.subr.bf16.mxu1 %v865_v19  ;;  %v887_v42 = vld [vmem:[#allocation9 + $0x20] sm:$0xff]   ;;  %v888_v43 = vld [vmem:[#allocation9 + $0x58] sm:$0xff]   ;;  %v890_v45 = vld [vmem:[#allocation9 + $0x50] sm:$0xff]  }
  0x43   :  { %201 = vmatpush1.bf16.msra.mxu0 %v841_v8  ;;  %v889_v44 = vld [vmem:[#allocation9 + $0x18] sm:$0xff]   ;;  %v891_v46 = vld [vmem:[#allocation9 + $0x10] sm:$0xff]   ;;  %v892_v47 = vld [vmem:[#allocation9 + $0x48] sm:$0xff]   ;;  %p1015_p9 = por %p1014_p8, %p1013_p7 }
  0x44   :  { %202 = vmatprep.subr.bf16.mxu0 %v842_v11  ;;  %v893_v48 = vld [vmem:[#allocation9 + $0x8] sm:$0xff]   ;;  %v894_v49 = vld [vmem:[#allocation9 + $0x40] sm:$0xff]  }
  0x45   :  { %350 = vmatpush1.bf16.msra.mxu1 %v867_v23  ;;  %v895_v50 = vld [vmem:[#allocation9] sm:$0xff]   ;;  %p1016_p10 = pnand %p1015_p9, %p1009_p6 }
  0x46   :  { %351 = vmatprep.subr.bf16.mxu1 %v868_v24 }
  0x47   :  { %203 = vmatpush1.bf16.msra.mxu0 %v844_v14 }
  0x48   :  { %204 = vmatprep.subr.bf16.mxu0 %v845_v16 }
  0x49   :  { %352 = vmatpush1.bf16.msra.mxu1 %v870_v25 }
  0x4a   :  { %353 = vmatprep.subr.bf16.mxu1 %v871_v27 }
  0x4b   :  { %205 = vmatpush1.bf16.msra.mxu0 %v847_v17 }
  0x4c   :  { %206 = vmatprep.subr.bf16.mxu0 %v848_v20 }
  0x4d   :  { %354 = vmatpush1.bf16.msra.mxu1 %v873_v29 }
  0x4e   :  { %355 = vmatprep.subr.bf16.mxu1 %v874_v30 }
  0x4f   :  { %207 = vmatpush1.bf16.msra.mxu0 %v850_v21 }
  0x50   :  { %208 = vmatprep.subr.bf16.mxu0 %v851_v22 }
  0x51   :  { %356 = vmatpush1.bf16.msra.mxu1 %v876_v31 }
  0x52   :  { %357 = vmatprep.subr.bf16.mxu1 %v877_v32 }
  0x53   :  { %209 = vmatpush1.bf16.msra.mxu0 %v855_v26 }
  0x54   :  { %776 = vmatprep.subr.bf16.mxu0 %v880_v35 }
  0x55   :  { %358 = vmatpush1.bf16.msra.mxu1 %v879_v34 }
  0x56   :  { %227 = vmatmul.mubr.bf16.vlgmr.msra.gmra.mxu0 %v857_v28  ;;  %804 = vmatprep.subr.bf16.mxu1 %v880_v35 }
  0x57   :  { %236 = vmatprep.mubr.bf16.mxu0 %v1044_v0  ;;  %777 = vmatpush3.bf16.msra.mxu0 %v881_v36 }
  0x58   :  { %376 = vmatmul.mubr.bf16.vlgmr.msra.gmra.mxu1 %v857_v28  ;;  %778 = vmatprep.subr.bf16.mxu0 %v882_v37 }
  0x59   :  { %385 = vmatprep.mubr.bf16.mxu1 %v1044_v0  ;;  %812 = vmatpush3.bf16.msra.mxu1 %v881_v36 }
  0x5a   :  { %805 = vmatprep.subr.bf16.mxu1 %v882_v37 }
  0x5b   :  { %779 = vmatpush3.bf16.msra.mxu0 %v883_v38 }
  0x5c   :  { %780 = vmatprep.subr.bf16.mxu0 %v884_v39 }
  0x5d   :  { %813 = vmatpush3.bf16.msra.mxu1 %v883_v38 }
  0x5e   :  { %237 = vmatmul.mubr.bf16.gmra.mxu0 %v864_v33  ;;  %806 = vmatprep.subr.bf16.mxu1 %v884_v39 }
  0x5f   :  { %781 = vmatpush3.bf16.msra.mxu0 %v885_v40 }
  0x60   :  { %386 = vmatmul.mubr.bf16.gmra.mxu1 %v864_v33  ;;  %782 = vmatprep.subr.bf16.mxu0 %v886_v41 }
  0x61   :  { %814 = vmatpush3.bf16.msra.mxu1 %v885_v40 }
  0x62   :  { %807 = vmatprep.subr.bf16.mxu1 %v886_v41 }
  0x63   :  { %783 = vmatpush3.bf16.msra.mxu0 %v887_v42 }
  0x64   :  { %784 = vmatprep.subr.bf16.mxu0 %v888_v43 }
  0x65   :  { %815 = vmatpush3.bf16.msra.mxu1 %v887_v42 }
  0x66   :  { %808 = vmatprep.subr.bf16.mxu1 %v888_v43 }
  0x67   :  { %785 = vmatpush3.bf16.msra.mxu0 %v889_v44 }
  0x68   :  { %786 = vmatprep.subr.bf16.mxu0 %v890_v45 }
  0x69   :  { %816 = vmatpush3.bf16.msra.mxu1 %v889_v44 }
  0x6a   :  { %809 = vmatprep.subr.bf16.mxu1 %v890_v45 }
  0x6b   :  { %787 = vmatpush3.bf16.msra.mxu0 %v891_v46 }
  0x6c   :  { %788 = vmatprep.subr.bf16.mxu0 %v892_v47 }
  0x6d   :  { %817 = vmatpush3.bf16.msra.mxu1 %v891_v46 }
  0x6e   :  { %810 = vmatprep.subr.bf16.mxu1 %v892_v47 }
  0x6f   :  { %789 = vmatpush3.bf16.msra.mxu0 %v893_v48 }
  0x70   :  { %790 = vmatprep.subr.bf16.mxu0 %v894_v49 }
  0x71   :  { %818 = vmatpush3.bf16.msra.mxu1 %v893_v48 }
  0x72   :  { %811 = vmatprep.subr.bf16.mxu1 %v894_v49 }
  0x73   :  { %791 = vmatpush3.bf16.msra.mxu0 %v895_v50 }
  0x75   :  { %819 = vmatpush3.bf16.msra.mxu1 %v895_v50 }
 0x116   :  { %v228_v51 = vpop.f32.mrf.mxu0 }
 0x117   :  { %v733_v52 = vmul.f32 -1.442695, %v228_v51 }
 0x118   :  { %v230_v53 = vpop.f32.mrf.mxu0  ;;  %v377_v8 = vpop.f32.mrf.mxu1 }
 0x119   :  { %896 = vpow2.f32 %v733_v52  ;;  %v734_v54 = vmul.f32 -1.442695, %v230_v53 }
 0x11a   :  { %v232_v55 = vpop.f32.mrf.mxu0  ;;  %v379_v13 = vpop.f32.mrf.mxu1 }
 0x11b   :  { %898 = vpow2.f32 %v734_v54  ;;  %v735_v56 = vmul.f32 -1.442695, %v232_v55 }
 0x11c   :  { %v234_v57 = vpop.f32.mrf.mxu0  ;;  %v381_v18 = vpop.f32.mrf.mxu1 }
 0x11d   :  { %900 = vpow2.f32 %v735_v56  ;;  %v736_v58 = vmul.f32 -1.442695, %v234_v57 }
 0x11e   :  { %v1099_v59 = vpop.f32.mrf.mxu0  ;;  %v383_v22 = vpop.f32.mrf.mxu1 }
 0x11f   :  { %902 = vpow2.f32 %v736_v58  ;;  %v737_v60 = vmul.f32 -1.442695, %v1099_v59 }
 0x120   :  { %v240_v61 = vpop.f32.mrf.mxu0  ;;  %v387_v26 = vpop.f32.mrf.mxu1 }
 0x121   :  { %904 = vpow2.f32 %v737_v60  ;;  %v738_v62 = vmul.f32 -1.442695, %v240_v61 }
 0x122   :  { %v242_v63 = vpop.f32.mrf.mxu0  ;;  %v389_v33 = vpop.f32.mrf.mxu1 }
 0x123   :  { %906 = vpow2.f32 %v738_v62  ;;  %v739_v0 = vmul.f32 -1.442695, %v242_v63 }
 0x124   :  { %v244_v1 = vpop.f32.mrf.mxu0  ;;  %v391_v42 = vpop.f32.mrf.mxu1 }
 0x125   :  { %908 = vpow2.f32 %v739_v0  ;;  %v740_v2 = vmul.f32 -1.442695, %v244_v1 }
 0x126   :  { %v897_v3 = vpop.eup %896  ;;  %v393_v49 = vpop.f32.mrf.mxu1 }
 0x127   :  { %910 = vpow2.f32 %v740_v2  ;;  %v420_v5 = vadd.f32 1.0, %v897_v3 }
 0x128   :  { %v899_v4 = vpop.eup %898 }
 0x129   :  { %v421_v6 = vadd.f32 1.0, %v899_v4 }
 0x12a   :  { %v901_v7 = vpop.eup %900 }
 0x12b   :  { %912 = vrcp.f32 %v421_v6  ;;  %v422_v9 = vadd.f32 1.0, %v901_v7 }
 0x12c   :  { %v903_v10 = vpop.eup %902  ;;  %914 = vrcp.f32 %v420_v5 }
 0x12d   :  { %916 = vrcp.f32 %v422_v9  ;;  %v423_v11 = vadd.f32 1.0, %v903_v10 }
 0x12e   :  { %v905_v12 = vpop.eup %904 }
 0x12f   :  { %918 = vrcp.f32 %v423_v11  ;;  %v424_v15 = vadd.f32 1.0, %v905_v12 }
 0x130   :  { %v907_v14 = vpop.eup %906 }
 0x131   :  { %v425_v16 = vadd.f32 1.0, %v907_v14 }
 0x132   :  { %v909_v17 = vpop.eup %908 }
 0x133   :  { %920 = vrcp.f32 %v425_v16  ;;  %v426_v19 = vadd.f32 1.0, %v909_v17 }
 0x134   :  { %v911_v20 = vpop.eup %910  ;;  %922 = vrcp.f32 %v424_v15 }
 0x135   :  { %924 = vrcp.f32 %v426_v19  ;;  %v427_v21 = vadd.f32 1.0, %v911_v20 }
 0x137   :  { %926 = vrcp.f32 %v427_v21 }
 0x138   :  { %v913_v23 = vpop.eup %912 }
 0x139   :  { %v915_v24 = vpop.eup %914  ;;  %v445_v27 = vmul.f32 %v913_v23, %v230_v53 }
 0x13a   :  { %v917_v25 = vpop.eup %916  ;;  %v444_v30 = vmul.f32 %v915_v24, %v228_v51 }
 0x13b   :  { %v446_v28 = vmul.f32 %v917_v25, %v232_v55  ;;  %v453_v34 = vmul.f32 %v445_v27, %v379_v13 }
 0x13c   :  { %v919_v29 = vpop.eup %918  ;;  %v452_v37 = vmul.f32 %v444_v30, %v377_v8 }
 0x13d   :  { %v447_v31 = vmul.f32 %v919_v29, %v234_v57  ;;  %v454_v32 = vmul.f32 %v446_v28, %v381_v18 }
 0x13f   :  { %v455_v35 = vmul.f32 %v447_v31, %v383_v22  ;;  %v496_v41 = vpack.c.bf16 %v454_v32, %v452_v37 }
 0x140   :  { %v921_v36 = vpop.eup %920 }
 0x141   :  { %v923_v38 = vpop.eup %922  ;;  %v497_v39 = vpack.c.bf16 %v455_v35, %v453_v34  ;;  %v449_v43 = vmul.f32 %v921_v36, %v240_v61 }
 0x142   :  { %v925_v40 = vpop.eup %924  ;;  %v448_v46 = vmul.f32 %v923_v38, %v1099_v59 }
 0x143   :  { %v450_v44 = vmul.f32 %v925_v40, %v242_v63  ;;  %628 = vmatprep.mubr.bf16.mxu0 %v497_v39  ;;  %v457_v50 = vmul.f32 %v449_v43, %v389_v33 }
 0x144   :  { %v927_v45 = vpop.eup %926  ;;  %629 = vmatmul.mubr.bf16.vlgmr.msra.gmra.mxu0 %v496_v41  ;;  %v456_v52 = vmul.f32 %v448_v46, %v387_v26 }
 0x145   :  { %v451_v47 = vmul.f32 %v927_v45, %v244_v1  ;;  %v458_v48 = vmul.f32 %v450_v44, %v391_v42 }
 0x147   :  { %v459_v51 = vmul.f32 %v451_v47, %v393_v49  ;;  %v498_v54 = vpack.c.bf16 %v458_v48, %v456_v52 }
 0x149   :  { %v499_v53 = vpack.c.bf16 %v459_v51, %v457_v50 }
 0x14b   :  { %636 = vmatprep.mubr.bf16.mxu1 %v499_v53 }
 0x14c   :  { %637 = vmatmul.mubr.bf16.vlgmr.msra.gmra.mxu1 %v498_v54 }
 0x204   :  { %v792_v55 = vpop.f32.mrf.mxu0 }
 0x206   :  { %v793_v56 = vpop.f32.mrf.mxu0 }
 0x207   :  { %v794_v60 = vadd.f32 %v793_v56, %v792_v55 }
 0x208   :  { %v795_v57 = vpop.f32.mrf.mxu0 }
 0x20a   :  { %v796_v58 = vpop.f32.mrf.mxu0 }
 0x20b   :  { %v797_v61 = vadd.f32 %v796_v58, %v795_v57 }
 0x20c   :  { %v798_v62 = vpop.f32.mrf.mxu1 }
 0x20d   :  { %v768_v63 = vpack.c.bf16 %v797_v61, %v794_v60 }
 0x20e   :  { %v799_v59 = vpop.f32.mrf.mxu1 }
 0x20f   :  { %769 = vst [vmem:[#allocation11] sm:$0xff] %v768_v63   ;;  %v800_v2 = vadd.f32 %v799_v59, %v798_v62 }
 0x210   :  { %v801_v0 = vpop.f32.mrf.mxu1 }
 0x212   :  { %v802_v1 = vpop.f32.mrf.mxu1 }
 0x213   :  { %v803_v3 = vadd.f32 %v802_v1, %v801_v0 }
 0x215   :  { %v773_v4 = vpack.c.bf16 %v803_v3, %v800_v2 }
 0x217   :  { %775 = vst [vmem:[#allocation11 + $0x8] sm:$0xff] %v773_v4  }
 0x218   :  { %1019 = shalt.err (!%p1016_p10)
}
 0x219   :  { %691 = dma.vmem_to_hbm [thread:$0]  %s686_s3, 256, %s1113_s4, [#allocation5], %s1040_s25, %s1040_s25, %s1041_s26  }
 0x21a   :  { %1034 = dma.done.wait [#allocation5], 256  }
 0x21b   :  { %1035 = vsyncadd [#allocation5], 4294967040 }
 0x21c   :  { %695 = vsyncpa [#allocation4], 1 }
 0x21d   :  { %696 = vsyncpa [#allocation7], 1 }
 0x21e   :  { %697 = vsyncpa [#allocation10], 1 }
 0x21f   :  { %698 = vsyncpa [#allocation5], 1 }

</bundles_post_ra>
